<compile_context>
chip_gen: v7x
topology: tpu7x:2x2x1
jax: 0.10.0
libtpu: 0.0.40
codegen_flags: <defaults>
</compile_context>

<pallas_src>
import jax
import jax.numpy as jnp
from jax.experimental import pallas as pl
from jax.experimental.pallas import tpu as pltpu

STATE_SIZE = 9
ACTION_SIZE = 9
H1 = 64
H2 = 32
DEFAULT_TB = 2048          # batch tile; sweepable via block_b
SMALL_BATCH_THRESHOLD = 64  # below this, default to the fused pure-JAX path


def _round_up(n, m):
    return ((n + m - 1) // m) * m


def dqn_kernel(x_ref, w1_ref, b1_ref, w2_ref, b2_ref, wq_ref, bq_ref, out_ref):
    # Cast x to bf16 in-kernel (input stays f32 in HBM, no wrapper pad/cast).
    x = x_ref[...].astype(jnp.bfloat16)
    # fc1 + ReLU  (bf16 x bf16 -> f32 accumulate, f32 bias add)
    h1 = jnp.dot(x, w1_ref[...], preferred_element_type=jnp.float32)
    h1 = jnp.maximum(h1 + b1_ref[...], 0.0).astype(jnp.bfloat16)
    # fc2 + ReLU
    h2 = jnp.dot(h1, w2_ref[...], preferred_element_type=jnp.float32)
    h2 = jnp.maximum(h2 + b2_ref[...], 0.0).astype(jnp.bfloat16)
    # q head (no activation), narrow 9-wide output
    q = jnp.dot(h2, wq_ref[...], preferred_element_type=jnp.float32)
    out_ref[...] = q + bq_ref[...]


def _dqn_fused_jax(x, params):
    """Small-batch path: plain JAX ops (fuse into the caller's jit).

    Mirrors the kernel's bf16-input / f32-accumulate arithmetic.
    """
    xb = x.astype(jnp.bfloat16)
    w1 = params["w1"].astype(jnp.bfloat16)
    w2 = params["w2"].astype(jnp.bfloat16)
    wq = params["wq"].astype(jnp.bfloat16)
    h1 = jnp.dot(xb, w1, preferred_element_type=jnp.float32) + params["b1"]
    h1 = jnp.maximum(h1, 0.0).astype(jnp.bfloat16)
    h2 = jnp.dot(h1, w2, preferred_element_type=jnp.float32) + params["b2"]
    h2 = jnp.maximum(h2, 0.0).astype(jnp.bfloat16)
    return jnp.dot(h2, wq, preferred_element_type=jnp.float32) + params["bq"]


def dqn_forward(x, params, *, block_b=DEFAULT_TB, use_kernel=None):
    """x: (B, STATE_SIZE) float32. params: dict of f32 weights/biases.

    Returns (B, ACTION_SIZE) float32.
    """
    B = x.shape[0]

    # Small-batch online-inference path: dispatch overhead dominates a
    # few-hundred-FLOP forward; let XLA fuse it instead.
    if use_kernel is None:
        use_kernel = B > SMALL_BATCH_THRESHOLD
    if not use_kernel:
        return _dqn_fused_jax(x.astype(jnp.float32), params)

    # ---- Batch tile selection ----------------------------------------------
    TB = min(block_b, _round_up(B, 16))
    if B > 256:
        # v7x megacore: make sure the "parallel" batch axis has >= 2 tiles so
        # both TensorCores get work (neutral on v5e/v6e).
        TB = min(TB, _round_up((B + 1) // 2, 16))
    if TB >= B:
        # Single tile: block == full array dim is always a legal block shape.
        TB = B
    grid = (pl.cdiv(B, TB),)

    # bf16 weights, f32 biases (accumulation is f32 in-kernel).
    w1 = params["w1"].astype(jnp.bfloat16)
    w2 = params["w2"].astype(jnp.bfloat16)
    wq = params["wq"].astype(jnp.bfloat16)
    b1 = params["b1"].astype(jnp.float32)
    b2 = params["b2"].astype(jnp.float32)
    bq = params["bq"].astype(jnp.float32)

    # Weights/biases use a constant index_map so they stay VMEM-resident and
    # are not re-DMA'd every grid step.
    const = lambda shape: pl.BlockSpec(shape, lambda i: (0,) * len(shape))

    out = pl.pallas_call(
        dqn_kernel,
        grid=grid,
        in_specs=[
            pl.BlockSpec((TB, STATE_SIZE), lambda i: (i, 0)),   # x: batch-tiled f32
            const((STATE_SIZE, H1)), const((1, H1)),            # w1, b1 (pinned)
            const((H1, H2)), const((1, H2)),                    # w2, b2 (pinned)
            const((H2, ACTION_SIZE)), const((1, ACTION_SIZE)),  # wq, bq (pinned)
        ],
        out_specs=pl.BlockSpec((TB, ACTION_SIZE), lambda i: (i, 0)),
        out_shape=jax.ShapeDtypeStruct((B, ACTION_SIZE), jnp.float32),
        compiler_params=pltpu.CompilerParams(
            dimension_semantics=("parallel",)),
    )(x.astype(jnp.float32), w1, b1, w2, b2, wq, bq)

    return out


def init_params(key):
    """Deterministic init mimicking PyTorch Linear default: U(-1/sqrt(fan_in), ...)."""
    def linear(k, fan_in, fan_out):
        kw, kb = jax.random.split(k)
        bound = 1.0 / jnp.sqrt(fan_in)
        w = jax.random.uniform(kw, (fan_in, fan_out), jnp.float32, -bound, bound)
        b = jax.random.uniform(kb, (1, fan_out), jnp.float32, -bound, bound)
        return w, b

    k1, k2, k3 = jax.random.split(key, 3)
    w1, b1 = linear(k1, STATE_SIZE, H1)
    w2, b2 = linear(k2, H1, H2)
    wq, bq = linear(k3, H2, ACTION_SIZE)
    return {"w1": w1, "b1": b1, "w2": w2, "b2": b2, "wq": wq, "bq": bq}


def dqn_reference_f32(x, p):
    h1 = jnp.maximum(x @ p["w1"] + p["b1"], 0.0)
    h2 = jnp.maximum(h1 @ p["w2"] + p["b2"], 0.0)
    return h2 @ p["wq"] + p["bq"]


def dqn_reference_bf16(x, p):
    """Mirrors the kernel's bf16-input / f32-accumulate arithmetic."""
    return _dqn_fused_jax(x, p)


if __name__ == "__main__":
    key = jax.random.PRNGKey(0)
    kx, kp = jax.random.split(key)

    B = 8
    x = jax.random.normal(kx, (B, STATE_SIZE), jnp.float32)
    params = init_params(kp)

    # Force the Pallas kernel at small batch (single tile, block == full dims).
    out = dqn_forward(x, params, use_kernel=True)
    out = jax.block_until_ready(out)
    assert out.shape == (B, ACTION_SIZE)

    # Tight check against a bf16-matched reference (same arithmetic as kernel).
    ref_bf16 = dqn_reference_bf16(x, params)
    assert jnp.allclose(out, ref_bf16, atol=5e-3, rtol=5e-3), "mismatch vs bf16 reference"

    # Loose check against the full-f32 reference (bf16 quantization headroom).
    ref_f32 = dqn_reference_f32(x, params)
    assert jnp.allclose(out, ref_f32, atol=5e-2, rtol=5e-2), "mismatch vs f32 reference"

    # Multi-tile ragged grid (B > TB threshold, B not a tile multiple) to cover
    # the pipelined / parallel-axis / masked-last-tile path.
    B_big = 1000
    x_big = jax.random.normal(jax.random.PRNGKey(1), (B_big, STATE_SIZE), jnp.float32)
    out_big = jax.block_until_ready(dqn_forward(x_big, params))
    ref_big = dqn_reference_bf16(x_big, params)
    assert out_big.shape == (B_big, ACTION_SIZE)
    assert jnp.allclose(out_big, ref_big, atol=5e-3, rtol=5e-3), "mismatch (large batch)"

    # Small-batch fused-JAX fallback path (default for B <= 64).
    out_small = jax.block_until_ready(dqn_forward(x, params))
    assert out_small.shape == (B, ACTION_SIZE)
    assert jnp.allclose(out_small, ref_bf16, atol=5e-3, rtol=5e-3), "mismatch (fused path)"

    print("KERNEL_OK")
</pallas_src>

<mosaic_0001>
module attributes {stable_mosaic.version = 11 : i64} {
  func.func @dqn_kernel(%arg0: i32, %arg1: memref<8x9xf32, #tpu.memory_space<vmem>>, %arg2: memref<9x64xbf16, #tpu.memory_space<vmem>>, %arg3: memref<1x64xf32, #tpu.memory_space<vmem>>, %arg4: memref<64x32xbf16, #tpu.memory_space<vmem>>, %arg5: memref<1x32xf32, #tpu.memory_space<vmem>>, %arg6: memref<32x9xbf16, #tpu.memory_space<vmem>>, %arg7: memref<1x9xf32, #tpu.memory_space<vmem>>, %arg8: memref<8x9xf32, #tpu.memory_space<vmem>>) attributes {dimension_semantics = [#tpu.dimension_semantics<parallel>], iteration_bounds = array<i64: 1>, scalar_prefetch = 0 : i64, scratch_operands = 0 : i64, tpu.core_type = #tpu.core_type<tc>, window_params = [{transform_indices = @transform_0, window_bounds = array<i64: 8, 9>}, {pipeline_mode = #tpu.pipeline_mode<synchronous>, transform_indices = @transform_1, window_bounds = array<i64: 9, 64>}, {pipeline_mode = #tpu.pipeline_mode<synchronous>, transform_indices = @transform_2, window_bounds = array<i64: 1, 64>}, {pipeline_mode = #tpu.pipeline_mode<synchronous>, transform_indices = @transform_3, window_bounds = array<i64: 64, 32>}, {pipeline_mode = #tpu.pipeline_mode<synchronous>, transform_indices = @transform_4, window_bounds = array<i64: 1, 32>}, {pipeline_mode = #tpu.pipeline_mode<synchronous>, transform_indices = @transform_5, window_bounds = array<i64: 32, 9>}, {pipeline_mode = #tpu.pipeline_mode<synchronous>, transform_indices = @transform_6, window_bounds = array<i64: 1, 9>}, {transform_indices = @transform_7, window_bounds = array<i64: 8, 9>}]} {
    %c0 = arith.constant 0 : index
    %c0_0 = arith.constant 0 : index
    %0 = vector.load %arg1[%c0, %c0_0] : memref<8x9xf32, #tpu.memory_space<vmem>>, vector<8x9xf32>
    %1 = arith.truncf %0 : vector<8x9xf32> to vector<8x9xbf16>
    %c0_1 = arith.constant 0 : index
    %c0_2 = arith.constant 0 : index
    %2 = vector.load %arg2[%c0_1, %c0_2] : memref<9x64xbf16, #tpu.memory_space<vmem>>, vector<9x64xbf16>
    %cst = arith.constant dense<0.000000e+00> : vector<8x64xf32>
    %3 = tpu.matmul %1, %2, %cst {dimension_numbers = #tpu.dot_dimension_numbers<[1], [0], [0], [1], [0, 0, 1, 1], [], []>} : vector<8x9xbf16>, vector<9x64xbf16>, vector<8x64xf32> -> vector<8x64xf32>
    %c0_3 = arith.constant 0 : index
    %c0_4 = arith.constant 0 : index
    %4 = vector.load %arg3[%c0_3, %c0_4] : memref<1x64xf32, #tpu.memory_space<vmem>>, vector<1x64xf32>
    %5 = vector.broadcast %4 : vector<1x64xf32> to vector<8x64xf32>
    %6 = arith.addf %3, %5 : vector<8x64xf32>
    %cst_5 = arith.constant 0.000000e+00 : f32
    %7 = vector.broadcast %cst_5 : f32 to vector<8x64xf32>
    %8 = arith.maximumf %6, %7 : vector<8x64xf32>
    %9 = arith.truncf %8 : vector<8x64xf32> to vector<8x64xbf16>
    %c0_6 = arith.constant 0 : index
    %c0_7 = arith.constant 0 : index
    %10 = vector.load %arg4[%c0_6, %c0_7] : memref<64x32xbf16, #tpu.memory_space<vmem>>, vector<64x32xbf16>
    %cst_8 = arith.constant dense<0.000000e+00> : vector<8x32xf32>
    %11 = tpu.matmul %9, %10, %cst_8 {dimension_numbers = #tpu.dot_dimension_numbers<[1], [0], [0], [1], [0, 0, 1, 1], [], []>} : vector<8x64xbf16>, vector<64x32xbf16>, vector<8x32xf32> -> vector<8x32xf32>
    %c0_9 = arith.constant 0 : index
    %c0_10 = arith.constant 0 : index
    %12 = vector.load %arg5[%c0_9, %c0_10] : memref<1x32xf32, #tpu.memory_space<vmem>>, vector<1x32xf32>
    %13 = vector.broadcast %12 : vector<1x32xf32> to vector<8x32xf32>
    %14 = arith.addf %11, %13 : vector<8x32xf32>
    %cst_11 = arith.constant 0.000000e+00 : f32
    %15 = vector.broadcast %cst_11 : f32 to vector<8x32xf32>
    %16 = arith.maximumf %14, %15 : vector<8x32xf32>
    %17 = arith.truncf %16 : vector<8x32xf32> to vector<8x32xbf16>
    %c0_12 = arith.constant 0 : index
    %c0_13 = arith.constant 0 : index
    %18 = vector.load %arg6[%c0_12, %c0_13] : memref<32x9xbf16, #tpu.memory_space<vmem>>, vector<32x9xbf16>
    %cst_14 = arith.constant dense<0.000000e+00> : vector<8x9xf32>
    %19 = tpu.matmul %17, %18, %cst_14 {dimension_numbers = #tpu.dot_dimension_numbers<[1], [0], [0], [1], [0, 0, 1, 1], [], []>} : vector<8x32xbf16>, vector<32x9xbf16>, vector<8x9xf32> -> vector<8x9xf32>
    %c0_15 = arith.constant 0 : index
    %c0_16 = arith.constant 0 : index
    %20 = vector.load %arg7[%c0_15, %c0_16] : memref<1x9xf32, #tpu.memory_space<vmem>>, vector<1x9xf32>
    %21 = vector.broadcast %20 : vector<1x9xf32> to vector<8x9xf32>
    %22 = arith.addf %19, %21 : vector<8x9xf32>
    %c0_17 = arith.constant 0 : index
    %c0_18 = arith.constant 0 : index
    %23 = vector.load %arg8[%c0_17, %c0_18] : memref<8x9xf32, #tpu.memory_space<vmem>>, vector<8x9xf32>
    tpu.vector_store %arg8[%c0_17, %c0_18], %22 {strides = array<i32>} : memref<8x9xf32, #tpu.memory_space<vmem>>, vector<8x9xf32>,
    return
  }
  func.func @transform_0(%arg0: i32) -> (i32, i32) {
    %c0_i32 = arith.constant 0 : i32
    %c0_i32_0 = arith.constant 0 : i32
    return %arg0, %c0_i32 : i32, i32
  }
  func.func @transform_1(%arg0: i32) -> (i32, i32) {
    %c0_i32 = arith.constant 0 : i32
    %c0_i32_0 = arith.constant 0 : i32
    %c0_i32_1 = arith.constant 0 : i32
    return %c0_i32, %c0_i32_0 : i32, i32
  }
  func.func @transform_2(%arg0: i32) -> (i32, i32) {
    %c0_i32 = arith.constant 0 : i32
    %c0_i32_0 = arith.constant 0 : i32
    %c0_i32_1 = arith.constant 0 : i32
    return %c0_i32, %c0_i32_0 : i32, i32
  }
  func.func @transform_3(%arg0: i32) -> (i32, i32) {
    %c0_i32 = arith.constant 0 : i32
    %c0_i32_0 = arith.constant 0 : i32
    %c0_i32_1 = arith.constant 0 : i32
    return %c0_i32, %c0_i32_0 : i32, i32
  }
  func.func @transform_4(%arg0: i32) -> (i32, i32) {
    %c0_i32 = arith.constant 0 : i32
    %c0_i32_0 = arith.constant 0 : i32
    %c0_i32_1 = arith.constant 0 : i32
    return %c0_i32, %c0_i32_0 : i32, i32
  }
  func.func @transform_5(%arg0: i32) -> (i32, i32) {
    %c0_i32 = arith.constant 0 : i32
    %c0_i32_0 = arith.constant 0 : i32
    %c0_i32_1 = arith.constant 0 : i32
    return %c0_i32, %c0_i32_0 : i32, i32
  }
  func.func @transform_6(%arg0: i32) -> (i32, i32) {
    %c0_i32 = arith.constant 0 : i32
    %c0_i32_0 = arith.constant 0 : i32
    %c0_i32_1 = arith.constant 0 : i32
    return %c0_i32, %c0_i32_0 : i32, i32
  }
  func.func @transform_7(%arg0: i32) -> (i32, i32) {
    %c0_i32 = arith.constant 0 : i32
    %c0_i32_0 = arith.constant 0 : i32
    return %arg0, %c0_i32 : i32, i32
  }
}

</mosaic_0001>

<bundles_post_ra>
// kernel: tpu_custom_call.1
= control target key start
LH: loop header
LB: loop body
LE: loop exit
PB: predicated region body
PF: predicated region fallthrough
CT: control target
= control target key end

     0   :  { %vm48_vm0 = vcmask 1043456   ;;  %v348_v0 = vmov 0.0   ;;  %vm49_vm1 = vcmask 1044480   ;;  %v349_v2 = vmov 65535   ;;  %s442_s0 = inlined_call_operand.vmem [shape: f32[8,9], index: 0, kind: input, shape index: {}]   ;;  %s443_s1 = inlined_call_operand.vmem [shape: bf16[9,64], index: 1, kind: input, shape index: {}]   ;;  %s444_s2 = inlined_call_operand.vmem [shape: f32[1,64], index: 2, kind: input, shape index: {}]   ;;  %s445_s3 = inlined_call_operand.vmem [shape: bf16[64,32], index: 3, kind: input, shape index: {}]   ;;  %s446_s4 = inlined_call_operand.vmem [shape: f32[1,32], index: 4, kind: input, shape index: {}]   ;;  %s447_s5 = inlined_call_operand.vmem [shape: bf16[32,9], index: 5, kind: input, shape index: {}]   ;;  %s448_s6 = inlined_call_operand.vmem [shape: f32[1,9], index: 6, kind: input, shape index: {}]   ;;  %s449_s7 = inlined_call_operand.hbm [shape: f32[8,9], index: 7, kind: output, shape index: {}]  }
   0x1   :  { %287 = vmatprep.subr.bf16.mxu0 %v348_v0  ;;  %v317_v1 = vld [vmem:[%s443_s1] sm:$0x1f]   ;;  %293 = vmatprep.subr.bf16.mxu1 %v348_v0  ;;  %v50_v3 = vsel %vm48_vm0, 4294967295, %v349_v2  ;;  %vm350_vm2 = vmmov 0   ;;  %vm44_vm3 = vcmask 72704   ;;  %v319_v8 = vld [vmem:[%s445_s3 + $0x8] sm:$0xff]  }
   0x2   :  { %289 = vmatprep.mubr.msk.bf16.mxu0 %vm350_vm2, %v348_v0  ;;  %v28_v4 = vld [vmem:[%s442_s0] sm:$0xff]  ;;  %301 = vmatprep.mubr.msk.bf16.mxu1 %vm350_vm2, %v348_v0  ;;  %v51_v5 = vsel %vm49_vm1, %v50_v3, 0 }
   0x3   :  { %v318_v6 = vld [vmem:[%s445_s3] sm:$0xff]   ;;  %v53_v7 = vand.u32 %v317_v1, %v51_v5  ;;  %v29_v9 = vpack.c.bf16 %v28_v4, %v28_v4 }
   0x4   :  { %294 = vmatpush3.bf16.msra.mxu1 %v318_v6 }
   0x5   :  { %288 = vmatpush3.bf16.msra.mxu0 %v53_v7  ;;  %295 = vmatprep.subr.bf16.mxu1 %v348_v0 }
   0x6   :  { %305 = vmatprep.subr.bf16.mxu0 %v348_v0 }
   0x7   :  { %12 = vsyncpa [#allocation3], 0  ;;  %v320_v10 = vld [vmem:[%s445_s3 + $0x10] sm:$0xff]   ;;  %v321_v11 = vld [vmem:[%s445_s3 + $0x18] sm:$0xff]   ;;  %vm136_vm4 = vcmask 523264   ;;  %vm205_vm5 = vcmask 261120  }
   0x8   :  { %290 = vmatmul.mubr.msk.bf16.vlgmr.msra.gmra.mrb[0].mxu0 %vm44_vm3, %v29_v9  ;;  %296 = vmatpush3.bf16.msra.mxu1 %v319_v8  ;;  %v322_v12 = vld [vmem:[%s447_s5] sm:$0xff]   ;;  %v323_v21 = vld [vmem:[%s447_s5 + $0x8] sm:$0xff]   ;;  %s351_s19 = smov [#allocation2]  }
   0x9   :  { %297 = vmatprep.subr.bf16.mxu1 %v348_v0  ;;  %309 = vmatprep.mubr.msk.bf16.mxu0 %vm350_vm2, %v348_v0  ;;  %v264_v13 = vld [vmem:[%s444_s2] ss:$0 sm:$0xff]  ;;  %s256_s5 = sshll.u32 %s351_s19, 4  ;;  %s257_s5 = int_to_ptr.vmem [resolvable:$true] %s256_s5 }
   0xa   :  { %306 = vmatpush3.bf16.msra.mxu0 %v322_v12  ;;  %v267_v22 = vld [vmem:[%s446_s4] ss:$0 sm:$0xff]  ;;  %s324_s4 = scalar_lea.vmem %s257_s5, 128  ;;  %p329_p1 = scmp.lt.s32.totalorder %s257_s5, %s257_s5 }
   0xb   :  { %307 = vmatprep.subr.bf16.mxu0 %v348_v0  ;;  %v273_v30 = vld [vmem:[%s448_s6] ss:$0 sm:$0xff]  ;;  %p325_p0 = scmp.ne.s32.totalorder %s257_s5, %s324_s4  ;;  %p330_p2 = scmp.lt.s32.totalorder %s324_s4, %s324_s4 }
   0xc   :  { %298 = vmatpush3.bf16.msra.mxu1 %v320_v10 }
   0xd   :  { %299 = vmatprep.subr.bf16.mxu1 %v348_v0  ;;  %p331_p3 = por %p330_p2, %p329_p1 }
   0xe   :  { %308 = vmatpush3.bf16.msra.mxu0 %v323_v21 }
   0xf   :  { %p332_p4 = pnand %p331_p3, %p325_p0 }
  0x10   :  { %300 = vmatpush3.bf16.msra.mxu1 %v321_v11 }
  0xdb   :  { %v89_v14 = vpop.f32.mrb[0].mxu0 }
  0xdc   :  { %v90_v15 = vadd.f32 %v264_v13, %v89_v14  ;;  %v291_v16 = vpop.f32.mrb[1].mxu0 }
  0xdd   :  { %v92_v17 = vpop.f32.mrb[2].mxu0 }
  0xde   :  { %v95_v18 = vmax.f32 %v90_v15, 0.0  ;;  %v292_v19 = vpop.f32.mrb[3].mxu0 }
  0xe0   :  { %v96_v20 = vpack.c.bf16 %v95_v18, %v95_v18 }
  0xe2   :  { %302 = vmatmul.mubr.msk.bf16.vlgmr.msra.gmra.mrb[0].mxu1 %vm136_vm4, %v96_v20 }
 0x1b5   :  { %v174_v23 = vpop.f32.mrb[0].mxu1 }
 0x1b6   :  { %v175_v24 = vadd.f32 %v267_v22, %v174_v23  ;;  %v303_v25 = vpop.f32.mrb[1].mxu1 }
 0x1b7   :  { %v177_v26 = vpop.f32.mrb[2].mxu1 }
 0x1b8   :  { %v180_v27 = vmax.f32 %v175_v24, 0.0  ;;  %v304_v28 = vpop.f32.mrb[3].mxu1 }
 0x1ba   :  { %v181_v29 = vpack.c.bf16 %v180_v27, %v180_v27 }
 0x1bc   :  { %310 = vmatmul.mubr.msk.bf16.vlgmr.msra.gmra.mrb[4].mxu0 %vm205_vm5, %v181_v29 }
 0x28f   :  { %v243_v31 = vpop.f32.mrb[4].mxu0 }
 0x290   :  { %v244_v32 = vadd.f32 %v273_v30, %v243_v31  ;;  %v311_v33 = vpop.f32.mrb[5].mxu0 }
 0x291   :  { %v246_v34 = vpop.f32.mrb[6].mxu0 }
 0x292   :  { %249 = vst.msk [vmem:[#allocation2] sm:$0xff] %vm44_vm3, %v244_v32  ;;  %v312_v35 = vpop.f32.mrb[7].mxu0 }
 0x293   :  { %335 = shalt.err (!%p332_p4)
}
 0x294   :  { %s336_s6 = scalar_lea.hbm %s449_s7, 128 }
 0x295   :  { %p337_p5 = scmp.ne.s32.totalorder %s449_s7, %s336_s6  ;;  %p340_p6 = scmp.lt.u32.totalorder %s336_s6, %s449_s7 }
 0x297   :  { %p342_p7 = pnand %p340_p6, %p337_p5 }
 0x299   :  { %345 = shalt.err (!%p342_p7)
}
 0x29a   :  { %259 = dma.vmem_to_hbm [thread:$0]  %s257_s5, 128, %s449_s7, [#allocation3]  }
 0x29b   :  { %346 = dma.done.wait [#allocation3], 128  }
 0x29c   :  { %347 = vsyncadd [#allocation3], 4294967168 }
 0x29d   :  { %263 = vsyncpa [#allocation3], 1 }

</bundles_post_ra>
